<compile_context>
chip_gen: v7x
topology: tpu7x:2x2x1
jax: 0.10.0
libtpu: 0.0.40
codegen_flags: <defaults>
</compile_context>

<pallas_src>
import jax
import jax.numpy as jnp
import numpy as np
from jax.experimental import pallas as pl
from jax.experimental.pallas import tpu as pltpu

EPS = 1e-5


# ----------------------------------------------------------------------------
# Host-side construction of the small structure matrices (re-parametrize the
# conv weights; built once per call, outside the kernel).
# ----------------------------------------------------------------------------
def _reflect_index(r, n):
    """Padded index r in [0, n+1] -> source index for 1-pixel reflect padding."""
    if r == 0:
        return 1
    if r == n + 1:
        return n - 2
    return r - 1


def _col_conv_cat(w_hwio, W, G):
    """A_cat (G*W*C, 3*G*W*C): per row-tap kh, (x2d @ A_cat[:, kh*L:(kh+1)*L])
    folds the kw taps, the column reflect padding and the conv weights, block-
    diagonally per folded image:
        (x2d @ A[kh])[i, g*WC + w*C + co]
            == sum_{kw,cin} x[g, i, reflect(w+kw), cin] * w_hwio[kh, kw, cin, co]
    """
    C = w_hwio.shape[2]
    WC = W * C
    eye_g = jnp.eye(G, dtype=jnp.float32)
    panels = []
    for kh in range(3):
        a = jnp.zeros((WC, WC), jnp.float32)
        for kw in range(3):
            p = np.zeros((W, W), np.float32)
            for w in range(W):
                p[_reflect_index(w + kw, W), w] = 1.0
            a = a + jnp.kron(jnp.asarray(p), w_hwio[kh, kw].astype(jnp.float32))
        panels.append(jnp.kron(eye_g, a))            # (L, L) block-diag per image
    return jnp.concatenate(panels, axis=1)            # (L, 3L)


def _channel_mean_matrix(H, W, C, G):
    """M (L, L): (row_sums @ M) = per-image per-channel mean broadcast over (w, c)."""
    m = np.kron(np.ones((W, W), np.float32), np.eye(C, dtype=np.float32))
    m = m / np.float32(H * W)
    return jnp.asarray(np.kron(np.eye(G, dtype=np.float32), m))


# ----------------------------------------------------------------------------
# Fused kernel: conv3x3 -> IN -> ReLU -> conv3x3 -> IN -> (+ residual)
# ----------------------------------------------------------------------------
def _resnet_block_kernel(x_ref, a1_ref, a2_ref, m_ref, o_ref):
    x2d = x_ref[0].astype(jnp.float32)                      # (H, L)
    H, L = x2d.shape

    def row_reflect_sum(g0, g1, g2):
        # kh=1 term is the identity over rows.  kh=0: out[h]=g0[h-1], border
        # row 0 = g0[1].  kh=2: out[h]=g2[h+1], border row H-1 = g2[H-2].
        t0 = jnp.concatenate([g0[1:2, :], g0[: H - 1, :]], axis=0)
        t2 = jnp.concatenate([g2[1:, :], g2[H - 2:H - 1, :]], axis=0)
        return g1 + t0 + t2

    def conv_in(z, a_ref):
        # One wide MXU matmul gives all three row-tap panels at once.
        g = jnp.dot(z, a_ref[...], preferred_element_type=jnp.float32)   # (H, 3L)
        acc = row_reflect_sum(g[:, :L], g[:, L:2 * L], g[:, 2 * L:])     # conv out
        # (bias omitted: a per-channel constant cancels under affine-free IN)
        # InstanceNorm stats: reduce over rows first, then one (2,L)@(L,L)
        # matmul broadcasts per-(image,channel) mean / E[x^2] over (w, c).
        s = jnp.sum(acc, axis=0, keepdims=True)                          # (1, L)
        s2 = jnp.sum(acc * acc, axis=0, keepdims=True)                   # (1, L)
        stats = jnp.dot(jnp.concatenate([s, s2], axis=0), m_ref[...],
                        preferred_element_type=jnp.float32)              # (2, L)
        mean = stats[0:1, :]
        var = jnp.maximum(stats[1:2, :] - mean * mean, 0.0)
        return (acc - mean) * jax.lax.rsqrt(var + EPS)

    y1 = jnp.maximum(conv_in(x2d, a1_ref), 0.0)      # conv -> IN -> ReLU
    # use_dropout=False: no dropout layer in this configuration.
    y2 = conv_in(y1, a2_ref)                         # conv -> IN
    out = (x2d + y2).astype(o_ref.dtype)             # residual
    o_ref[...] = out.reshape(o_ref.shape)


def resnet_block_nhwc(x, w1, b1, w2, b2):
    """x: (N, H, W, C) float32; conv weights HWIO (3,3,C,C). Returns x + conv_block(x).

    (b1/b2 are accepted for interface parity but are mathematically a no-op
     before the affine-free InstanceNorm, so they are not sent to the kernel.)
    """
    del b1, b2
    N, H, W, C = x.shape
    WC = W * C

    # Fold G images into the lane dim so the kernel's last dim reaches 128.
    # (On v7x one may prefer to keep >=2 grid steps to use both TensorCores.)
    if 128 % WC == 0:
        G = min(max(1, 128 // WC), N)
    else:
        G = 1
    while N % G != 0:
        G -= 1
    L = G * WC
    steps = N // G

    A1 = _col_conv_cat(w1, W, G)                     # (L, 3L)
    A2 = _col_conv_cat(w2, W, G)                     # (L, 3L)
    M = _channel_mean_matrix(H, W, C, G)             # (L, L)

    # Layout plumbing: lane dim ordered (g, w, c) within each grid step.
    x2d = jnp.transpose(x.reshape(steps, G, H, W, C), (0, 2, 1, 3, 4))
    x2d = x2d.reshape(steps, H, L)

    out2d = pl.pallas_call(
        _resnet_block_kernel,
        out_shape=jax.ShapeDtypeStruct((steps, H, L), x.dtype),
        grid=(steps,),
        in_specs=[
            pl.BlockSpec((1, H, L), lambda n: (n, 0, 0)),   # x (G images / step)
            pl.BlockSpec((L, 3 * L), lambda n: (0, 0)),     # A1_cat
            pl.BlockSpec((L, 3 * L), lambda n: (0, 0)),     # A2_cat
            pl.BlockSpec((L, L), lambda n: (0, 0)),         # M
        ],
        out_specs=pl.BlockSpec((1, H, L), lambda n: (n, 0, 0)),
        compiler_params=pltpu.CompilerParams(
            dimension_semantics=("parallel",),
        ),
    )(x2d, A1, A2, M)

    out = out2d.reshape(steps, H, G, W, C)
    out = jnp.transpose(out, (0, 2, 1, 3, 4)).reshape(N, H, W, C)
    return out


# ----------------------------------------------------------------------------
# Pure-JAX reference (independent path, keeps the bias) for validation.
# ----------------------------------------------------------------------------
def _reflect_pad(z):
    return jnp.pad(z, ((0, 0), (1, 1), (1, 1), (0, 0)), mode="reflect")


def _reference_nhwc(x, w1, b1, w2, b2):
    def conv(z, w, b):
        y = jax.lax.conv_general_dilated(
            _reflect_pad(z), w, window_strides=(1, 1), padding="VALID",
            dimension_numbers=("NHWC", "HWIO", "NHWC"))
        return y + b

    def inorm(z):
        m = jnp.mean(z, axis=(1, 2), keepdims=True)
        v = jnp.mean((z - m) ** 2, axis=(1, 2), keepdims=True)
        return (z - m) / jnp.sqrt(v + EPS)

    y = jnp.maximum(inorm(conv(x, w1, b1)), 0.0)
    y = inorm(conv(y, w2, b2))
    return x + y


if __name__ == "__main__":
    # Module config: dim=4, padding_type='reflect', norm_layer=InstanceNorm2d,
    # use_dropout=False, use_bias=True.
    N, C, H, W = 2, 4, 16, 16
    key = jax.random.PRNGKey(0)
    kx, kw1, kb1, kw2, kb2 = jax.random.split(key, 5)

    # PyTorch-style NCHW input, transposed to the kernel's NHWC layout.
    x_nchw = jax.random.normal(kx, (N, C, H, W), dtype=jnp.float32)
    x = jnp.transpose(x_nchw, (0, 2, 3, 1))  # NHWC

    # Deterministic synthetic parameters (HWIO conv weights).
    w1 = 0.1 * jax.random.normal(kw1, (3, 3, C, C), dtype=jnp.float32)
    b1 = 0.1 * jax.random.normal(kb1, (C,), dtype=jnp.float32)
    w2 = 0.1 * jax.random.normal(kw2, (3, 3, C, C), dtype=jnp.float32)
    b2 = 0.1 * jax.random.normal(kb2, (C,), dtype=jnp.float32)

    out = jax.jit(resnet_block_nhwc)(x, w1, b1, w2, b2)
    out = jax.block_until_ready(out)

    ref = _reference_nhwc(x, w1, b1, w2, b2)
    assert out.shape == (N, H, W, C)
    assert bool(jnp.all(jnp.isfinite(out)))
    assert jnp.allclose(out, ref, atol=2e-4, rtol=2e-4)

    print("KERNEL_OK")
</pallas_src>

<mosaic_0001>
module attributes {stable_mosaic.version = 11 : i64} {
  func.func @_resnet_block_kernel(%arg0: i32, %arg1: memref<1x16x128xf32, #tpu.memory_space<vmem>>, %arg2: memref<128x384xf32, #tpu.memory_space<vmem>>, %arg3: memref<128x384xf32, #tpu.memory_space<vmem>>, %arg4: memref<128x128xf32, #tpu.memory_space<vmem>>, %arg5: memref<1x16x128xf32, #tpu.memory_space<vmem>>) attributes {dimension_semantics = [#tpu.dimension_semantics<parallel>], iteration_bounds = array<i64: 1>, scalar_prefetch = 0 : i64, scratch_operands = 0 : i64, tpu.core_type = #tpu.core_type<tc>, window_params = [{transform_indices = @transform_0, window_bounds = array<i64: 1, 16, 128>}, {pipeline_mode = #tpu.pipeline_mode<synchronous>, transform_indices = @transform_1, window_bounds = array<i64: 128, 384>}, {pipeline_mode = #tpu.pipeline_mode<synchronous>, transform_indices = @transform_2, window_bounds = array<i64: 128, 384>}, {pipeline_mode = #tpu.pipeline_mode<synchronous>, transform_indices = @transform_3, window_bounds = array<i64: 128, 128>}, {transform_indices = @transform_4, window_bounds = array<i64: 1, 16, 128>}]} {
    %c0 = arith.constant 0 : index
    %c0_0 = arith.constant 0 : index
    %c0_1 = arith.constant 0 : index
    %0 = vector.load %arg1[%c0, %c0_0, %c0_1] : memref<1x16x128xf32, #tpu.memory_space<vmem>>, vector<1x16x128xf32>
    %1 = vector.shape_cast %0 : vector<1x16x128xf32> to vector<16x128xf32>
    %c0_2 = arith.constant 0 : index
    %c0_3 = arith.constant 0 : index
    %2 = vector.load %arg2[%c0_2, %c0_3] : memref<128x384xf32, #tpu.memory_space<vmem>>, vector<128x384xf32>
    %cst = arith.constant dense<0.000000e+00> : vector<16x384xf32>
    %3 = tpu.matmul %1, %2, %cst {dimension_numbers = #tpu.dot_dimension_numbers<[1], [0], [0], [1], [0, 0, 1, 1], [], []>} : vector<16x128xf32>, vector<128x384xf32>, vector<16x384xf32> -> vector<16x384xf32>
    %4 = vector.extract_strided_slice %3 {offsets = [0, 0], sizes = [16, 128], strides = [1, 1]} : vector<16x384xf32> to vector<16x128xf32>
    %5 = vector.extract_strided_slice %3 {offsets = [0, 128], sizes = [16, 128], strides = [1, 1]} : vector<16x384xf32> to vector<16x128xf32>
    %6 = vector.extract_strided_slice %3 {offsets = [0, 256], sizes = [16, 128], strides = [1, 1]} : vector<16x384xf32> to vector<16x128xf32>
    %7 = vector.extract_strided_slice %4 {offsets = [1, 0], sizes = [1, 128], strides = [1, 1]} : vector<16x128xf32> to vector<1x128xf32>
    %8 = vector.extract_strided_slice %4 {offsets = [0, 0], sizes = [15, 128], strides = [1, 1]} : vector<16x128xf32> to vector<15x128xf32>
    %9 = tpu.concatenate %7, %8 in 0 : vector<1x128xf32>, vector<15x128xf32> -> vector<16x128xf32>
    %10 = vector.extract_strided_slice %6 {offsets = [1, 0], sizes = [15, 128], strides = [1, 1]} : vector<16x128xf32> to vector<15x128xf32>
    %11 = vector.extract_strided_slice %6 {offsets = [14, 0], sizes = [1, 128], strides = [1, 1]} : vector<16x128xf32> to vector<1x128xf32>
    %12 = tpu.concatenate %10, %11 in 0 : vector<15x128xf32>, vector<1x128xf32> -> vector<16x128xf32>
    %13 = arith.addf %5, %9 : vector<16x128xf32>
    %14 = arith.addf %13, %12 : vector<16x128xf32>
    %cst_4 = arith.constant dense<0.000000e+00> : vector<128xf32>
    %15 = vector.multi_reduction <add>, %14, %cst_4 [0] : vector<16x128xf32> to vector<128xf32>
    %16 = vector.shape_cast %15 : vector<128xf32> to vector<1x128xf32>
    %17 = arith.mulf %14, %14 : vector<16x128xf32>
    %cst_5 = arith.constant dense<0.000000e+00> : vector<128xf32>
    %18 = vector.multi_reduction <add>, %17, %cst_5 [0] : vector<16x128xf32> to vector<128xf32>
    %19 = vector.shape_cast %18 : vector<128xf32> to vector<1x128xf32>
    %20 = tpu.concatenate %16, %19 in 0 : vector<1x128xf32>, vector<1x128xf32> -> vector<2x128xf32>
    %c0_6 = arith.constant 0 : index
    %c0_7 = arith.constant 0 : index
    %21 = vector.load %arg4[%c0_6, %c0_7] : memref<128x128xf32, #tpu.memory_space<vmem>>, vector<128x128xf32>
    %cst_8 = arith.constant dense<0.000000e+00> : vector<2x128xf32>
    %22 = tpu.matmul %20, %21, %cst_8 {dimension_numbers = #tpu.dot_dimension_numbers<[1], [0], [0], [1], [0, 0, 1, 1], [], []>} : vector<2x128xf32>, vector<128x128xf32>, vector<2x128xf32> -> vector<2x128xf32>
    %23 = vector.extract_strided_slice %22 {offsets = [0, 0], sizes = [1, 128], strides = [1, 1]} : vector<2x128xf32> to vector<1x128xf32>
    %24 = vector.extract_strided_slice %22 {offsets = [1, 0], sizes = [1, 128], strides = [1, 1]} : vector<2x128xf32> to vector<1x128xf32>
    %25 = arith.mulf %23, %23 : vector<1x128xf32>
    %26 = arith.subf %24, %25 : vector<1x128xf32>
    %cst_9 = arith.constant 0.000000e+00 : f32
    %27 = vector.broadcast %cst_9 : f32 to vector<1x128xf32>
    %28 = arith.maximumf %26, %27 : vector<1x128xf32>
    %29 = vector.broadcast %23 : vector<1x128xf32> to vector<16x128xf32>
    %30 = arith.subf %14, %29 : vector<16x128xf32>
    %cst_10 = arith.constant 9.99999974E-6 : f32
    %31 = vector.broadcast %cst_10 : f32 to vector<1x128xf32>
    %32 = arith.addf %28, %31 : vector<1x128xf32>
    %33 = math.rsqrt %32 : vector<1x128xf32>
    %34 = vector.broadcast %33 : vector<1x128xf32> to vector<16x128xf32>
    %35 = arith.mulf %30, %34 : vector<16x128xf32>
    %cst_11 = arith.constant 0.000000e+00 : f32
    %36 = vector.broadcast %cst_11 : f32 to vector<16x128xf32>
    %37 = arith.maximumf %35, %36 : vector<16x128xf32>
    %c0_12 = arith.constant 0 : index
    %c0_13 = arith.constant 0 : index
    %38 = vector.load %arg3[%c0_12, %c0_13] : memref<128x384xf32, #tpu.memory_space<vmem>>, vector<128x384xf32>
    %cst_14 = arith.constant dense<0.000000e+00> : vector<16x384xf32>
    %39 = tpu.matmul %37, %38, %cst_14 {dimension_numbers = #tpu.dot_dimension_numbers<[1], [0], [0], [1], [0, 0, 1, 1], [], []>} : vector<16x128xf32>, vector<128x384xf32>, vector<16x384xf32> -> vector<16x384xf32>
    %40 = vector.extract_strided_slice %39 {offsets = [0, 0], sizes = [16, 128], strides = [1, 1]} : vector<16x384xf32> to vector<16x128xf32>
    %41 = vector.extract_strided_slice %39 {offsets = [0, 128], sizes = [16, 128], strides = [1, 1]} : vector<16x384xf32> to vector<16x128xf32>
    %42 = vector.extract_strided_slice %39 {offsets = [0, 256], sizes = [16, 128], strides = [1, 1]} : vector<16x384xf32> to vector<16x128xf32>
    %43 = vector.extract_strided_slice %40 {offsets = [1, 0], sizes = [1, 128], strides = [1, 1]} : vector<16x128xf32> to vector<1x128xf32>
    %44 = vector.extract_strided_slice %40 {offsets = [0, 0], sizes = [15, 128], strides = [1, 1]} : vector<16x128xf32> to vector<15x128xf32>
    %45 = tpu.concatenate %43, %44 in 0 : vector<1x128xf32>, vector<15x128xf32> -> vector<16x128xf32>
    %46 = vector.extract_strided_slice %42 {offsets = [1, 0], sizes = [15, 128], strides = [1, 1]} : vector<16x128xf32> to vector<15x128xf32>
    %47 = vector.extract_strided_slice %42 {offsets = [14, 0], sizes = [1, 128], strides = [1, 1]} : vector<16x128xf32> to vector<1x128xf32>
    %48 = tpu.concatenate %46, %47 in 0 : vector<15x128xf32>, vector<1x128xf32> -> vector<16x128xf32>
    %49 = arith.addf %41, %45 : vector<16x128xf32>
    %50 = arith.addf %49, %48 : vector<16x128xf32>
    %cst_15 = arith.constant dense<0.000000e+00> : vector<128xf32>
    %51 = vector.multi_reduction <add>, %50, %cst_15 [0] : vector<16x128xf32> to vector<128xf32>
    %52 = vector.shape_cast %51 : vector<128xf32> to vector<1x128xf32>
    %53 = arith.mulf %50, %50 : vector<16x128xf32>
    %cst_16 = arith.constant dense<0.000000e+00> : vector<128xf32>
    %54 = vector.multi_reduction <add>, %53, %cst_16 [0] : vector<16x128xf32> to vector<128xf32>
    %55 = vector.shape_cast %54 : vector<128xf32> to vector<1x128xf32>
    %56 = tpu.concatenate %52, %55 in 0 : vector<1x128xf32>, vector<1x128xf32> -> vector<2x128xf32>
    %c0_17 = arith.constant 0 : index
    %c0_18 = arith.constant 0 : index
    %57 = vector.load %arg4[%c0_17, %c0_18] : memref<128x128xf32, #tpu.memory_space<vmem>>, vector<128x128xf32>
    %cst_19 = arith.constant dense<0.000000e+00> : vector<2x128xf32>
    %58 = tpu.matmul %56, %57, %cst_19 {dimension_numbers = #tpu.dot_dimension_numbers<[1], [0], [0], [1], [0, 0, 1, 1], [], []>} : vector<2x128xf32>, vector<128x128xf32>, vector<2x128xf32> -> vector<2x128xf32>
    %59 = vector.extract_strided_slice %58 {offsets = [0, 0], sizes = [1, 128], strides = [1, 1]} : vector<2x128xf32> to vector<1x128xf32>
    %60 = vector.extract_strided_slice %58 {offsets = [1, 0], sizes = [1, 128], strides = [1, 1]} : vector<2x128xf32> to vector<1x128xf32>
    %61 = arith.mulf %59, %59 : vector<1x128xf32>
    %62 = arith.subf %60, %61 : vector<1x128xf32>
    %cst_20 = arith.constant 0.000000e+00 : f32
    %63 = vector.broadcast %cst_20 : f32 to vector<1x128xf32>
    %64 = arith.maximumf %62, %63 : vector<1x128xf32>
    %65 = vector.broadcast %59 : vector<1x128xf32> to vector<16x128xf32>
    %66 = arith.subf %50, %65 : vector<16x128xf32>
    %cst_21 = arith.constant 9.99999974E-6 : f32
    %67 = vector.broadcast %cst_21 : f32 to vector<1x128xf32>
    %68 = arith.addf %64, %67 : vector<1x128xf32>
    %69 = math.rsqrt %68 : vector<1x128xf32>
    %70 = vector.broadcast %69 : vector<1x128xf32> to vector<16x128xf32>
    %71 = arith.mulf %66, %70 : vector<16x128xf32>
    %72 = arith.addf %1, %71 : vector<16x128xf32>
    %73 = vector.shape_cast %72 : vector<16x128xf32> to vector<1x16x128xf32>
    %c0_22 = arith.constant 0 : index
    %c0_23 = arith.constant 0 : index
    %c0_24 = arith.constant 0 : index
    %74 = vector.load %arg5[%c0_22, %c0_23, %c0_24] : memref<1x16x128xf32, #tpu.memory_space<vmem>>, vector<1x16x128xf32>
    tpu.vector_store %arg5[%c0_22, %c0_23, %c0_24], %73 {strides = array<i32>} : memref<1x16x128xf32, #tpu.memory_space<vmem>>, vector<1x16x128xf32>,
    return
  }
  func.func @transform_0(%arg0: i32) -> (i32, i32, i32) {
    %c0_i32 = arith.constant 0 : i32
    %c0_i32_0 = arith.constant 0 : i32
    %c0_i32_1 = arith.constant 0 : i32
    return %arg0, %c0_i32, %c0_i32_0 : i32, i32, i32
  }
  func.func @transform_1(%arg0: i32) -> (i32, i32) {
    %c0_i32 = arith.constant 0 : i32
    %c0_i32_0 = arith.constant 0 : i32
    %c0_i32_1 = arith.constant 0 : i32
    return %c0_i32, %c0_i32_0 : i32, i32
  }
  func.func @transform_2(%arg0: i32) -> (i32, i32) {
    %c0_i32 = arith.constant 0 : i32
    %c0_i32_0 = arith.constant 0 : i32
    %c0_i32_1 = arith.constant 0 : i32
    return %c0_i32, %c0_i32_0 : i32, i32
  }
  func.func @transform_3(%arg0: i32) -> (i32, i32) {
    %c0_i32 = arith.constant 0 : i32
    %c0_i32_0 = arith.constant 0 : i32
    %c0_i32_1 = arith.constant 0 : i32
    return %c0_i32, %c0_i32_0 : i32, i32
  }
  func.func @transform_4(%arg0: i32) -> (i32, i32, i32) {
    %c0_i32 = arith.constant 0 : i32
    %c0_i32_0 = arith.constant 0 : i32
    %c0_i32_1 = arith.constant 0 : i32
    return %arg0, %c0_i32, %c0_i32_0 : i32, i32, i32
  }
}

</mosaic_0001>

<bundles_post_ra>
// kernel: resnet_block_nhwc.1
= control target key start
LH: loop header
LB: loop body
LE: loop exit
PB: predicated region body
PF: predicated region fallthrough
CT: control target
= control target key end

     0   :  { %v1102_v3 = vmov 0.0   ;;  %vm1104_vm0 = vmmov 0   ;;  %vm223_vm1 = vcmask 1040384   ;;  %vm232_vm2 = vcmask 1046528   ;;  %s1578_s1 = inlined_call_operand.vmem [shape: f32[128,384], index: 1, kind: input, shape index: {}]   ;;  %s1579_s0 = inlined_call_operand.vmem [shape: f32[1,16,128], index: 0, kind: input, shape index: {}]   ;;  %s1580_s3 = inlined_call_operand.vmem [shape: f32[128,128], index: 3, kind: input, shape index: {}]   ;;  %s1581_s2 = inlined_call_operand.vmem [shape: f32[128,384], index: 2, kind: input, shape index: {}]   ;;  %s1582_s4 = inlined_call_operand.vmem [shape: f32[1,16,128], index: 4, kind: output, shape index: {}]  }
   0x1   :  { %v20_v0 = vld [vmem:[%s1578_s1 + $0x8] sm:$0xff]  ;;  %v23_v1 = vld [vmem:[%s1578_s1 + $0x20] sm:$0xff]  ;;  %131 = vmatprep.mubr.f32.mxu0 %v1102_v3  ;;  %v22_v5 = vld [vmem:[%s1578_s1 + $0x18] sm:$0xff] }
   0x2   :  { %v19_v2 = vld [vmem:[%s1578_s1] sm:$0xff]  ;;  %v919_v4 = vpack.c.bf16 %v23_v1, %v20_v0  ;;  %v21_v6 = vld [vmem:[%s1578_s1 + $0x10] sm:$0xff]  ;;  %v24_v7 = vld [vmem:[%s1578_s1 + $0x28] sm:$0xff] }
   0x3   :  { %v921_v8 = vpack.c.bf16 %v22_v5, %v19_v2  ;;  %v951_v9 = vpack.c.bf16 %v24_v7, %v21_v6  ;;  %v26_v10 = vld [vmem:[%s1578_s1 + $0x38] sm:$0xff]  ;;  %v29_v11 = vld [vmem:[%s1578_s1 + $0x50] sm:$0xff]  ;;  %v28_v14 = vld [vmem:[%s1578_s1 + $0x48] sm:$0xff] }
   0x4   :  { %v25_v12 = vld [vmem:[%s1578_s1 + $0x30] sm:$0xff]  ;;  %920 = vmatprep.subr.bf16.mxu0 %v919_v4  ;;  %v923_v13 = vpack.c.bf16 %v29_v11, %v26_v10  ;;  %v27_v15 = vld [vmem:[%s1578_s1 + $0x40] sm:$0xff]  ;;  %v30_v16 = vld [vmem:[%s1578_s1 + $0x58] sm:$0xff] }
   0x5   :  { %922 = vmatpush1.bf16.msra.mxu0 %v921_v8  ;;  %952 = vmatprep.subr.bf16.mxu1 %v951_v9  ;;  %v925_v17 = vpack.c.bf16 %v28_v14, %v25_v12  ;;  %v955_v18 = vpack.c.bf16 %v30_v16, %v27_v15  ;;  %v32_v19 = vld [vmem:[%s1578_s1 + $0x68] sm:$0xff]  ;;  %v35_v20 = vld [vmem:[%s1578_s1 + $0x80] sm:$0xff]  ;;  %v34_v23 = vld [vmem:[%s1578_s1 + $0x78] sm:$0xff]  ;;  %v1103_v14 = vmov 0.0|0.0  }
   0x6   :  { %v31_v21 = vld [vmem:[%s1578_s1 + $0x60] sm:$0xff]  ;;  %954 = vmatpush3.bf16.msra.mxu1 %v951_v9  ;;  %924 = vmatprep.subr.bf16.mxu0 %v923_v13  ;;  %v927_v22 = vpack.c.bf16 %v35_v20, %v32_v19  ;;  %v33_v24 = vld [vmem:[%s1578_s1 + $0x70] sm:$0xff]  ;;  %v36_v25 = vld [vmem:[%s1578_s1 + $0x88] sm:$0xff] }
   0x7   :  { %956 = vmatprep.subr.bf16.mxu1 %v955_v18  ;;  %v959_v26 = vpack.c.bf16 %v36_v25, %v33_v24  ;;  %v38_v27 = vld [vmem:[%s1578_s1 + $0x98] sm:$0xff]  ;;  %v41_v28 = vld [vmem:[%s1578_s1 + $0xb0] sm:$0xff]  ;;  %v39_v29 = vld [vmem:[%s1578_s1 + $0xa0] sm:$0xff]  ;;  %v929_v31 = vpack.c.bf16 %v34_v23, %v31_v21 }
   0x8   :  { %v42_v30 = vld [vmem:[%s1578_s1 + $0xb8] sm:$0xff]  ;;  %v931_v32 = vpack.c.bf16 %v41_v28, %v38_v27  ;;  %v37_v33 = vld [vmem:[%s1578_s1 + $0x90] sm:$0xff]  ;;  %v40_v34 = vld [vmem:[%s1578_s1 + $0xa8] sm:$0xff] }
   0x9   :  { %926 = vmatpush1.bf16.msra.mxu0 %v925_v17  ;;  %v963_v35 = vpack.c.bf16 %v42_v30, %v39_v29  ;;  %v44_v36 = vld [vmem:[%s1578_s1 + $0xc8] sm:$0xff]  ;;  %v47_v37 = vld [vmem:[%s1578_s1 + $0xe0] sm:$0xff]  ;;  %v45_v38 = vld [vmem:[%s1578_s1 + $0xd0] sm:$0xff]  ;;  %v933_v40 = vpack.c.bf16 %v40_v34, %v37_v33 }
   0xa   :  { %958 = vmatpush3.bf16.msra.mxu1 %v955_v18  ;;  %928 = vmatprep.subr.bf16.mxu0 %v927_v22  ;;  %v48_v39 = vld [vmem:[%s1578_s1 + $0xe8] sm:$0xff]  ;;  %v935_v41 = vpack.c.bf16 %v47_v37, %v44_v36  ;;  %v43_v42 = vld [vmem:[%s1578_s1 + $0xc0] sm:$0xff]  ;;  %v46_v43 = vld [vmem:[%s1578_s1 + $0xd8] sm:$0xff] }
   0xb   :  { %960 = vmatprep.subr.bf16.mxu1 %v959_v26  ;;  %v967_v44 = vpack.c.bf16 %v48_v39, %v45_v38  ;;  %v50_v45 = vld [vmem:[%s1578_s1 + $0xf8] sm:$0xff]  ;;  %v53_v46 = vld [vmem:[%s1578_s1 + $0x110] sm:$0xff]  ;;  %v51_v47 = vld [vmem:[%s1578_s1 + $0x100] sm:$0xff]  ;;  %v937_v49 = vpack.c.bf16 %v46_v43, %v43_v42 }
   0xc   :  { %v54_v48 = vld [vmem:[%s1578_s1 + $0x118] sm:$0xff]  ;;  %v1236_v50 = vld [vmem:[%s1579_s0] sm:$0xff]  ;;  %v939_v51 = vpack.c.bf16 %v53_v46, %v50_v45  ;;  %v49_v52 = vld [vmem:[%s1578_s1 + $0xf0] sm:$0xff] }
   0xd   :  { %930 = vmatpush1.bf16.msra.mxu0 %v929_v31  ;;  %v52_v53 = vld [vmem:[%s1578_s1 + $0x108] sm:$0xff]  ;;  %v971_v54 = vpack.c.bf16 %v54_v48, %v51_v47  ;;  %v59_v56 = vld [vmem:[%s1578_s1 + $0x140] sm:$0xff]  ;;  %811 = vmatprep.mubr.f32.mxu1 %v1236_v50  ;;  %v57_v57 = vld [vmem:[%s1578_s1 + $0x130] sm:$0xff] }
   0xe   :  { %962 = vmatpush3.bf16.msra.mxu1 %v959_v26  ;;  %932 = vmatprep.subr.bf16.mxu0 %v931_v32  ;;  %v56_v55 = vld [vmem:[%s1578_s1 + $0x128] sm:$0xff]  ;;  %v941_v59 = vpack.c.bf16 %v52_v53, %v49_v52  ;;  %v55_v61 = vld [vmem:[%s1578_s1 + $0x120] sm:$0xff]  ;;  %v58_v62 = vld [vmem:[%s1578_s1 + $0x138] sm:$0xff] }
   0xf   :  { %964 = vmatprep.subr.bf16.mxu1 %v963_v35  ;;  %v60_v58 = vld [vmem:[%s1578_s1 + $0x148] sm:$0xff]  ;;  %v943_v60 = vpack.c.bf16 %v59_v56, %v56_v55  ;;  %v62_v0 = vld [vmem:[%s1578_s1 + $0x158] sm:$0xff]  ;;  %v65_v1 = vld [vmem:[%s1578_s1 + $0x170] sm:$0xff]  ;;  %v945_v5 = vpack.c.bf16 %v58_v62, %v55_v61 }
  0x10   :  { %v975_v63 = vpack.c.bf16 %v60_v58, %v57_v57  ;;  %v63_v2 = vld [vmem:[%s1578_s1 + $0x160] sm:$0xff]  ;;  %v66_v4 = vld [vmem:[%s1578_s1 + $0x178] sm:$0xff]  ;;  %v947_v6 = vpack.c.bf16 %v65_v1, %v62_v0  ;;  %v61_v7 = vld [vmem:[%s1578_s1 + $0x150] sm:$0xff] }
  0x11   :  { %934 = vmatpush1.bf16.msra.mxu0 %v933_v40  ;;  %v64_v8 = vld [vmem:[%s1578_s1 + $0x168] sm:$0xff]  ;;  %v979_v9 = vpack.c.bf16 %v66_v4, %v63_v2  ;;  %v262_v11 = vld [vmem:[%s1580_s3] sm:$0xff]  ;;  %v264_v16 = vld [vmem:[%s1580_s3 + $0x10] sm:$0xff] }
  0x12   :  { %966 = vmatpush3.bf16.msra.mxu1 %v963_v35  ;;  %936 = vmatprep.subr.bf16.mxu0 %v935_v41  ;;  %v949_v10 = vpack.c.bf16 %v64_v8, %v61_v7  ;;  %v263_v12 = vld [vmem:[%s1580_s3 + $0x8] sm:$0xff]  ;;  %v265_v17 = vld [vmem:[%s1580_s3 + $0x18] sm:$0xff]  ;;  %v266_v19 = vld [vmem:[%s1580_s3 + $0x20] sm:$0xff] }
  0x13   :  { %968 = vmatprep.subr.bf16.mxu1 %v967_v44  ;;  %v1290_v13 = vld [vmem:[%s1579_s0 + $0x8] sm:$0xff]  ;;  %v1293_v15 = vpack.c.bf16 %v263_v12, %v262_v11  ;;  %v1308_v18 = vpack.c.bf16 %v265_v17, %v264_v16  ;;  %v268_v22 = vld [vmem:[%s1580_s3 + $0x30] sm:$0xff]  ;;  %v269_v23 = vld [vmem:[%s1580_s3 + $0x38] sm:$0xff] }
  0x14   :  { %v267_v20 = vld [vmem:[%s1580_s3 + $0x28] sm:$0xff]  ;;  %v1328_v24 = vpack.c.bf16 %v269_v23, %v268_v22  ;;  %v270_v25 = vld [vmem:[%s1580_s3 + $0x40] sm:$0xff]  ;;  %v272_v28 = vld [vmem:[%s1580_s3 + $0x50] sm:$0xff] }
  0x15   :  { %938 = vmatpush1.bf16.msra.mxu0 %v937_v49  ;;  %v1318_v21 = vpack.c.bf16 %v267_v20, %v266_v19  ;;  %v271_v26 = vld [vmem:[%s1580_s3 + $0x48] sm:$0xff]  ;;  %v273_v29 = vld [vmem:[%s1580_s3 + $0x58] sm:$0xff]  ;;  %v274_v31 = vld [vmem:[%s1580_s3 + $0x60] sm:$0xff] }
  0x16   :  { %970 = vmatpush3.bf16.msra.mxu1 %v967_v44  ;;  %940 = vmatprep.subr.bf16.mxu0 %v939_v51  ;;  %v1338_v27 = vpack.c.bf16 %v271_v26, %v270_v25  ;;  %v1348_v30 = vpack.c.bf16 %v273_v29, %v272_v28  ;;  %v275_v32 = vld [vmem:[%s1580_s3 + $0x68] sm:$0xff]  ;;  %v276_v34 = vld [vmem:[%s1580_s3 + $0x70] sm:$0xff]  ;;  %v277_v35 = vld [vmem:[%s1580_s3 + $0x78] sm:$0xff] }
  0x17   :  { %972 = vmatprep.subr.bf16.mxu1 %v971_v54  ;;  %v1358_v33 = vpack.c.bf16 %v275_v32, %v274_v31  ;;  %v1369_v36 = vpack.c.bf16 %v277_v35, %v276_v34  ;;  %v371_v37 = vld [vmem:[%s1581_s2 + $0x8] sm:$0xff]  ;;  %v374_v38 = vld [vmem:[%s1581_s2 + $0x20] sm:$0xff]  ;;  %v373_v41 = vld [vmem:[%s1581_s2 + $0x18] sm:$0xff] }
  0x18   :  { %v370_v39 = vld [vmem:[%s1581_s2] sm:$0xff]  ;;  %v1007_v40 = vpack.c.bf16 %v374_v38, %v371_v37  ;;  %v372_v42 = vld [vmem:[%s1581_s2 + $0x10] sm:$0xff]  ;;  %v375_v43 = vld [vmem:[%s1581_s2 + $0x28] sm:$0xff] }
  0x19   :  { %942 = vmatpush1.bf16.msra.mxu0 %v941_v59  ;;  %v1009_v44 = vpack.c.bf16 %v373_v41, %v370_v39  ;;  %v1039_v45 = vpack.c.bf16 %v375_v43, %v372_v42  ;;  %v377_v28 = vld [vmem:[%s1581_s2 + $0x38] sm:$0xff]  ;;  %v380_v29 = vld [vmem:[%s1581_s2 + $0x50] sm:$0xff]  ;;  %v379_v34 = vld [vmem:[%s1581_s2 + $0x48] sm:$0xff] }
  0x1a   :  { %974 = vmatpush3.bf16.msra.mxu1 %v971_v54  ;;  %944 = vmatprep.subr.bf16.mxu0 %v943_v60  ;;  %v1011_v31 = vpack.c.bf16 %v380_v29, %v377_v28  ;;  %v376_v32 = vld [vmem:[%s1581_s2 + $0x30] sm:$0xff]  ;;  %v378_v35 = vld [vmem:[%s1581_s2 + $0x40] sm:$0xff]  ;;  %v381_v38 = vld [vmem:[%s1581_s2 + $0x58] sm:$0xff] }
  0x1b   :  { %976 = vmatprep.subr.bf16.mxu1 %v975_v63  ;;  %v1013_v37 = vpack.c.bf16 %v379_v34, %v376_v32  ;;  %v1043_v39 = vpack.c.bf16 %v381_v38, %v378_v35  ;;  %v386_v41 = vld [vmem:[%s1581_s2 + $0x80] sm:$0xff]  ;;  %v408_v28 = vld [vmem:[%s1581_s2 + $0x130] sm:$0xff]  ;;  %v413_v34 = vld [vmem:[%s1581_s2 + $0x158] sm:$0xff] }
  0x1c   :  { %v382_v43 = vld [vmem:[%s1581_s2 + $0x60] sm:$0xff]  ;;  %v416_v35 = vld [vmem:[%s1581_s2 + $0x170] sm:$0xff] }
  0x1d   :  { %946 = vmatpush1.bf16.msra.mxu0 %v945_v5  ;;  %v412_v38 = vld [vmem:[%s1581_s2 + $0x150] sm:$0xff] }
  0x1e   :  { %978 = vmatpush3.bf16.msra.mxu1 %v975_v63  ;;  %948 = vmatprep.subr.bf16.mxu0 %v947_v6 }
  0x1f   :  { %980 = vmatprep.subr.bf16.mxu1 %v979_v9 }
  0x21   :  { %950 = vmatpush1.bf16.msra.mxu0 %v949_v10 }
  0x22   :  { %982 = vmatpush3.bf16.msra.mxu1 %v979_v9  ;;  %983 = vmatprep.subr.bf16.mxu0 %v1103_v14 }
  0x23   :  { %1008 = vmatprep.subr.bf16.mxu1 %v1007_v40  ;;  %v383_v40 = vld [vmem:[%s1581_s2 + $0x68] sm:$0xff] }
  0x24   :  { %132 = vmatmul.mubr.f32.vlgmr.msra.gmra.mrb[0].mxu0 %v1236_v50  ;;  %v1015_v42 = vpack.c.bf16 %v386_v41, %v383_v40  ;;  %v414_v40 = vld [vmem:[%s1581_s2 + $0x160] sm:$0xff] }
  0x25   :  { %812 = vmatmul.mubr.f32.vlgmr.msra.gmra.mrb[0].mxu1 %v1290_v13  ;;  %137 = vmatprep.mubr.f32.mxu0 %v1102_v3 }
  0x26   :  { %985 = vmatpush3.bf16.msra.mxu0 %v1293_v15  ;;  %482 = vmatprep.mubr.f32.mxu1 %v1102_v3 }
  0x27   :  { %986 = vmatprep.subr.bf16.mxu0 %v1103_v14  ;;  %1010 = vmatpush1.bf16.msra.mxu1 %v1009_v44  ;;  %v385_v44 = vld [vmem:[%s1581_s2 + $0x78] sm:$0xff] }
  0x28   :  { %138 = vmatmul.mubr.f32.gmra.mrb[2].mxu0 %v1290_v13  ;;  %1012 = vmatprep.subr.bf16.mxu1 %v1011_v31  ;;  %v411_v31 = vld [vmem:[%s1581_s2 + $0x148] sm:$0xff] }
  0x29   :  { %846 = vmatprep.mubr.msk.f32.mxu0 %vm1104_vm0, %v1102_v3  ;;  %v1063_v32 = vpack.c.bf16 %v411_v31, %v408_v28 }
  0x2a   :  { %988 = vmatpush3.bf16.msra.mxu0 %v1308_v18 }
  0x2b   :  { %989 = vmatprep.subr.bf16.mxu0 %v1103_v14  ;;  %1014 = vmatpush1.bf16.msra.mxu1 %v1013_v37  ;;  %v1035_v37 = vpack.c.bf16 %v416_v35, %v413_v34 }
  0x2c   :  { %1016 = vmatprep.subr.bf16.mxu1 %v1015_v42  ;;  %v417_v42 = vld [vmem:[%s1581_s2 + $0x178] sm:$0xff] }
  0x2e   :  { %991 = vmatpush3.bf16.msra.mxu0 %v1318_v21 }
  0x2f   :  { %992 = vmatprep.subr.bf16.mxu0 %v1103_v14 }
  0x32   :  { %994 = vmatpush3.bf16.msra.mxu0 %v1328_v24 }
  0x33   :  { %995 = vmatprep.subr.bf16.mxu0 %v1103_v14 }
  0x36   :  { %997 = vmatpush3.bf16.msra.mxu0 %v1338_v27 }
  0x37   :  { %998 = vmatprep.subr.bf16.mxu0 %v1103_v14 }
  0x3a   :  { %1000 = vmatpush3.bf16.msra.mxu0 %v1348_v30 }
  0x3b   :  { %1001 = vmatprep.subr.bf16.mxu0 %v1103_v14 }
  0x3e   :  { %1003 = vmatpush3.bf16.msra.mxu0 %v1358_v33 }
  0x3f   :  { %1004 = vmatprep.subr.bf16.mxu0 %v1103_v14 }
  0x42   :  { %1006 = vmatpush3.bf16.msra.mxu0 %v1369_v36 }
  0x43   :  { %1040 = vmatprep.subr.bf16.mxu0 %v1039_v45 }
  0xf7   :  { %v133_v46 = vpop.f32.mrb[0].mxu0 }
  0xf8   :  { %v220_v47 = vrot.slane %v133_v46, 1  ;;  %v224_v48 = vrot.slane %v133_v46, 7  ;;  %v135_v49 = vpop.f32.mrb[1].mxu0  ;;  %v813_v51 = vpop.f32.mrb[0].mxu1  ;;  %v1017_v46 = vpack.c.bf16 %v385_v44, %v382_v43  ;;  %v1067_v43 = vpack.c.bf16 %v417_v42, %v414_v40 }
  0xf9   :  { %v234_v52 = vrot.slane %v813_v51, 1  ;;  %v210_v53 = vpop.f32.mrb[1].mxu1  ;;  %v238_v55 = vrot.slane %v813_v51, 7  ;;  %v392_v51 = vld [vmem:[%s1581_s2 + $0xb0] sm:$0xff] }
  0xfa   :  { %v229_v54 = vsel %vm223_vm1, %v220_v47, %v224_v48  ;;  %v233_v56 = vrot.slane %v210_v53, 1  ;;  %v387_v47 = vld [vmem:[%s1581_s2 + $0x88] sm:$0xff]  ;;  %1018 = vmatpush1.bf16.msra.mxu1 %v1017_v46  ;;  %v388_v53 = vld [vmem:[%s1581_s2 + $0x90] sm:$0xff] }
  0xfb   :  { %v241_v57 = vadd.f32 %v229_v54, %v135_v49  ;;  %v139_v58 = vpop.f32.mrb[2].mxu0  ;;  %v240_v0 = vsel %vm232_vm2, %v234_v52, %v238_v55  ;;  %v389_v49 = vld [vmem:[%s1581_s2 + $0x98] sm:$0xff]  ;;  %v391_v54 = vld [vmem:[%s1581_s2 + $0xa8] sm:$0xff]  ;;  %v390_v55 = vld [vmem:[%s1581_s2 + $0xa0] sm:$0xff] }
  0xfc   :  { %v235_v59 = vsel %vm232_vm2, %v233_v56, %v234_v52  ;;  %v225_v60 = vrot.slane %v139_v58, 7  ;;  %v141_v61 = vpop.f32.mrb[3].mxu0  ;;  %v1019_v52 = vpack.c.bf16 %v392_v51, %v389_v49  ;;  %v1021_v56 = vpack.c.bf16 %v391_v54, %v388_v53 }
  0xfd   :  { %v1393_v62 = vadd.f32 %v241_v57, %v235_v59  ;;  %v393_v57 = vld [vmem:[%s1581_s2 + $0xb8] sm:$0xff]  ;;  %v395_v59 = vld [vmem:[%s1581_s2 + $0xc8] sm:$0xff]  ;;  %v354_v49 = vlaneseq }
  0xfe   :  { %v226_v63 = vsel %vm223_vm1, %v224_v48, %v225_v60  ;;  %1020 = vmatprep.subr.bf16.mxu1 %v1019_v52  ;;  %v1051_v58 = vpack.c.bf16 %v393_v57, %v390_v55  ;;  %v398_v60 = vld [vmem:[%s1581_s2 + $0xe0] sm:$0xff] }
  0xff   :  { %v242_v1 = vadd.f32 %v226_v63, %v141_v61  ;;  %v252_v4 = vmul.f32 %v1393_v62, %v1393_v62  ;;  %1022 = vmatpush1.bf16.msra.mxu1 %v1021_v56  ;;  %v1023_v61 = vpack.c.bf16 %v398_v60, %v395_v59  ;;  %v394_v63 = vld [vmem:[%s1581_s2 + $0xc0] sm:$0xff]  ;;  %v1533_v53 = vshrl.u32 %v354_v49, 7 }
 0x101   :  { %v1397_v2 = vadd.f32 %v242_v1, %v240_v0  ;;  %v397_v0 = vld [vmem:[%s1581_s2 + $0xd8] sm:$0xff]  ;;  %v396_v1 = vld [vmem:[%s1581_s2 + $0xd0] sm:$0xff]  ;;  %1024 = vmatprep.subr.bf16.mxu1 %v1023_v61  ;;  %v356_v54 = vsub.s32 0, %v1533_v53  ;;  %v364_v56 = vsub.s32 1, %v1533_v53 }
 0x103   :  { %v245_v5 = vadd.f32 %v1397_v2, %v1393_v62  ;;  %v253_v6 = vmul.f32 %v1397_v2, %v1397_v2 }
 0x105   :  { %v246_v7 = vrot.slane %v245_v5, 4  ;;  %v254_v8 = vadd.f32 %v253_v6, %v252_v4  ;;  %v1025_v4 = vpack.c.bf16 %v397_v0, %v394_v63 }
 0x107   :  { %v247_v9 = vadd.f32 %v246_v7, %v245_v5  ;;  %v255_v10 = vrot.slane %v254_v8, 4  ;;  %v399_v5 = vld [vmem:[%s1581_s2 + $0xe8] sm:$0xff]  ;;  %1026 = vmatpush1.bf16.msra.mxu1 %v1025_v4  ;;  %v401_v7 = vld [vmem:[%s1581_s2 + $0xf8] sm:$0xff] }
 0x108   :  { %v1055_v6 = vpack.c.bf16 %v399_v5, %v396_v1 }
 0x109   :  { %v248_v11 = vrot.slane %v247_v9, 2  ;;  %v256_v12 = vadd.f32 %v255_v10, %v254_v8  ;;  %v404_v8 = vld [vmem:[%s1581_s2 + $0x110] sm:$0xff] }
 0x10a   :  { %v400_v10 = vld [vmem:[%s1581_s2 + $0xf0] sm:$0xff] }
 0x10b   :  { %v249_v16 = vadd.f32 %v248_v11, %v247_v9  ;;  %v257_v17 = vrot.slane %v256_v12, 2  ;;  %v1027_v9 = vpack.c.bf16 %v404_v8, %v401_v7  ;;  %v403_v11 = vld [vmem:[%s1581_s2 + $0x108] sm:$0xff] }
 0x10d   :  { %v250_v19 = vrot.slane %v249_v16, 1  ;;  %v258_v20 = vadd.f32 %v257_v17, %v256_v12  ;;  %v402_v12 = vld [vmem:[%s1581_s2 + $0x100] sm:$0xff]  ;;  %v405_v17 = vld [vmem:[%s1581_s2 + $0x118] sm:$0xff]  ;;  %1028 = vmatprep.subr.bf16.mxu1 %v1027_v9 }
 0x10f   :  { %v259_v22 = vrot.slane %v258_v20, 1  ;;  %v251_v23 = vadd.f32 %v250_v19, %v249_v16  ;;  %v1029_v16 = vpack.c.bf16 %v403_v11, %v400_v10  ;;  %v1059_v19 = vpack.c.bf16 %v405_v17, %v402_v12 }
 0x111   :  { %v260_v25 = vadd.f32 %v259_v22, %v258_v20  ;;  %1030 = vmatpush1.bf16.msra.mxu1 %v1029_v16  ;;  %v407_v20 = vld [vmem:[%s1581_s2 + $0x128] sm:$0xff]  ;;  %v410_v22 = vld [vmem:[%s1581_s2 + $0x140] sm:$0xff] }
 0x113   :  { %v261_v26 = vsel %vm223_vm1, %v251_v23, %v260_v25  ;;  %v1031_v23 = vpack.c.bf16 %v410_v22, %v407_v20  ;;  %v406_v25 = vld [vmem:[%s1581_s2 + $0x120] sm:$0xff] }
 0x114   :  { %847 = vmatmul.mubr.f32.vlgmr.msra.gmra.mrb[4].mxu0 %v261_v26  ;;  %v409_v26 = vld [vmem:[%s1581_s2 + $0x138] sm:$0xff] }
 0x115   :  { %1042 = vmatpush3.bf16.msra.mxu0 %v1039_v45  ;;  %v384_v45 = vld [vmem:[%s1581_s2 + $0x70] sm:$0xff]  ;;  %v1033_v29 = vpack.c.bf16 %v409_v26, %v406_v25  ;;  %1032 = vmatprep.subr.bf16.mxu1 %v1031_v23 }
 0x116   :  { %1044 = vmatprep.subr.bf16.mxu0 %v1043_v39  ;;  %v1047_v48 = vpack.c.bf16 %v387_v47, %v384_v45 }
 0x117   :  { %1034 = vmatpush1.bf16.msra.mxu1 %v1033_v29 }
 0x118   :  { %1036 = vmatprep.subr.bf16.mxu1 %v1035_v37 }
 0x119   :  { %1046 = vmatpush3.bf16.msra.mxu0 %v1043_v39  ;;  %v415_v39 = vld [vmem:[%s1581_s2 + $0x168] sm:$0xff] }
 0x11a   :  { %1048 = vmatprep.subr.bf16.mxu0 %v1047_v48  ;;  %v1037_v41 = vpack.c.bf16 %v415_v39, %v412_v38 }
 0x11c   :  { %1038 = vmatpush1.bf16.msra.mxu1 %v1037_v41 }
 0x11d   :  { %1050 = vmatpush3.bf16.msra.mxu0 %v1047_v48  ;;  %1071 = vmatprep.subr.bf16.mxu1 %v1103_v14 }
 0x11e   :  { %1052 = vmatprep.subr.bf16.mxu0 %v1051_v58 }
 0x121   :  { %1054 = vmatpush3.bf16.msra.mxu0 %v1051_v58 }
 0x122   :  { %1056 = vmatprep.subr.bf16.mxu0 %v1055_v6 }
 0x125   :  { %1058 = vmatpush3.bf16.msra.mxu0 %v1055_v6 }
 0x126   :  { %1060 = vmatprep.subr.bf16.mxu0 %v1059_v19 }
 0x129   :  { %1062 = vmatpush3.bf16.msra.mxu0 %v1059_v19 }
 0x12a   :  { %1064 = vmatprep.subr.bf16.mxu0 %v1063_v32 }
 0x12d   :  { %1066 = vmatpush3.bf16.msra.mxu0 %v1063_v32 }
 0x12e   :  { %1068 = vmatprep.subr.bf16.mxu0 %v1067_v43 }
 0x131   :  { %1070 = vmatpush3.bf16.msra.mxu0 %v1067_v43 }
 0x1e7   :  { %v344_v44 = vpop.f32.mrb[4].mxu0 }
 0x1e8   :  { %v348_v45 = vmul.f32 %v344_v44, %v344_v44  ;;  %v848_v46 = vpop.f32.mrb[5].mxu0  ;;  %v357_v55 = vrot.slane %v344_v44, %v356_v54 }
 0x1ea   :  { %v350_v47 = vrot.slane %v348_v45, 7  ;;  %v358_v58 = vsub.f32 %v1393_v62, %v357_v55  ;;  %v359_v59 = vsub.f32 %v1397_v2, %v357_v55 }
 0x1ec   :  { %v352_v48 = vsub.f32 %v344_v44, %v350_v47 }
 0x1ee   :  { %v353_v51 = vmax.f32 %v352_v48, 0.0 }
 0x1f0   :  { %v360_v52 = vadd.f32 1e-05, %v353_v51 }
 0x1f2   :  { %1098 = vrsqrt.f32 %v360_v52 }
 0x1fc   :  { %v1099_v57 = vpop.eup %1098 }
 0x1fd   :  { %v365_v60 = vrot.slane %v1099_v57, %v364_v56 }
 0x1ff   :  { %v366_v61 = vmul.f32 %v365_v60, %v358_v58  ;;  %v367_v63 = vmul.f32 %v365_v60, %v359_v59 }
 0x201   :  { %v368_v0 = vmax.f32 %v366_v61, 0.0  ;;  %v369_v1 = vmax.f32 %v367_v63, 0.0 }
 0x203   :  { %483 = vmatmul.mubr.f32.vlgmr.msra.gmra.mrb[2].mxu1 %v368_v0  ;;  %881 = vmatprep.mubr.f32.mxu0 %v368_v0 }
 0x204   :  { %882 = vmatmul.mubr.f32.vlgmr.msra.gmra.mrb[6].mxu0 %v369_v1  ;;  %488 = vmatprep.mubr.f32.mxu1 %v1102_v3 }
 0x205   :  { %1073 = vmatpush3.bf16.msra.mxu1 %v1293_v15 }
 0x206   :  { %1074 = vmatprep.subr.bf16.mxu1 %v1103_v14 }
 0x207   :  { %489 = vmatmul.mubr.f32.gmra.mrb[4].mxu1 %v369_v1 }
 0x208   :  { %916 = vmatprep.mubr.msk.f32.mxu1 %vm1104_vm0, %v1102_v3 }
 0x209   :  { %1076 = vmatpush3.bf16.msra.mxu1 %v1308_v18 }
 0x20a   :  { %1077 = vmatprep.subr.bf16.mxu1 %v1103_v14 }
 0x20d   :  { %1079 = vmatpush3.bf16.msra.mxu1 %v1318_v21 }
 0x20e   :  { %1080 = vmatprep.subr.bf16.mxu1 %v1103_v14 }
 0x211   :  { %1082 = vmatpush3.bf16.msra.mxu1 %v1328_v24 }
 0x212   :  { %1083 = vmatprep.subr.bf16.mxu1 %v1103_v14 }
 0x215   :  { %1085 = vmatpush3.bf16.msra.mxu1 %v1338_v27 }
 0x216   :  { %1086 = vmatprep.subr.bf16.mxu1 %v1103_v14 }
 0x219   :  { %1088 = vmatpush3.bf16.msra.mxu1 %v1348_v30 }
 0x21a   :  { %1089 = vmatprep.subr.bf16.mxu1 %v1103_v14 }
 0x21d   :  { %1091 = vmatpush3.bf16.msra.mxu1 %v1358_v33 }
 0x21e   :  { %1092 = vmatprep.subr.bf16.mxu1 %v1103_v14 }
 0x221   :  { %1094 = vmatpush3.bf16.msra.mxu1 %v1369_v36 }
 0x2d6   :  { %v484_v3 = vpop.f32.mrb[2].mxu1 }
 0x2d7   :  { %v571_v15 = vrot.slane %v484_v3, 1  ;;  %v574_v18 = vrot.slane %v484_v3, 7  ;;  %v486_v21 = vpop.f32.mrb[3].mxu1  ;;  %v883_v24 = vpop.f32.mrb[6].mxu0 }
 0x2d8   :  { %v583_v62 = vrot.slane %v883_v24, 1  ;;  %v561_v2 = vpop.f32.mrb[7].mxu0  ;;  %v587_v6 = vrot.slane %v883_v24, 7 }
 0x2d9   :  { %v579_v27 = vsel %vm223_vm1, %v571_v15, %v574_v18  ;;  %v582_v4 = vrot.slane %v561_v2, 1 }
 0x2da   :  { %v590_v5 = vadd.f32 %v579_v27, %v486_v21  ;;  %v490_v30 = vpop.f32.mrb[4].mxu1  ;;  %v589_v10 = vsel %vm232_vm2, %v583_v62, %v587_v6 }
 0x2db   :  { %v584_v7 = vsel %vm232_vm2, %v582_v4, %v583_v62  ;;  %v575_v33 = vrot.slane %v490_v30, 7  ;;  %v492_v8 = vpop.f32.mrb[5].mxu1 }
 0x2dc   :  { %v592_v14 = vadd.f32 %v590_v5, %v584_v7 }
 0x2dd   :  { %v576_v36 = vsel %vm223_vm1, %v574_v18, %v575_v33 }
 0x2de   :  { %v591_v9 = vadd.f32 %v576_v36, %v492_v8  ;;  %v601_v12 = vmul.f32 %v592_v14, %v592_v14 }
 0x2e0   :  { %v593_v11 = vadd.f32 %v591_v9, %v589_v10 }
 0x2e2   :  { %v594_v16 = vadd.f32 %v593_v11, %v592_v14  ;;  %v602_v17 = vmul.f32 %v593_v11, %v593_v11 }
 0x2e4   :  { %v595_v19 = vrot.slane %v594_v16, 4  ;;  %v603_v20 = vadd.f32 %v602_v17, %v601_v12 }
 0x2e6   :  { %v596_v22 = vadd.f32 %v595_v19, %v594_v16  ;;  %v604_v23 = vrot.slane %v603_v20, 4 }
 0x2e8   :  { %v597_v25 = vrot.slane %v596_v22, 2  ;;  %v605_v26 = vadd.f32 %v604_v23, %v603_v20 }
 0x2ea   :  { %v598_v28 = vadd.f32 %v597_v25, %v596_v22  ;;  %v606_v29 = vrot.slane %v605_v26, 2 }
 0x2ec   :  { %v599_v31 = vrot.slane %v598_v28, 1  ;;  %v607_v32 = vadd.f32 %v606_v29, %v605_v26 }
 0x2ee   :  { %v608_v34 = vrot.slane %v607_v32, 1  ;;  %v600_v35 = vadd.f32 %v599_v31, %v598_v28 }
 0x2f0   :  { %v609_v37 = vadd.f32 %v608_v34, %v607_v32 }
 0x2f2   :  { %v610_v38 = vsel %vm223_vm1, %v600_v35, %v609_v37 }
 0x2f3   :  { %917 = vmatmul.mubr.f32.vlgmr.msra.gmra.mrb[6].mxu1 %v610_v38 }
 0x3c6   :  { %v677_v39 = vpop.f32.mrb[6].mxu1 }
 0x3c7   :  { %v681_v40 = vmul.f32 %v677_v39, %v677_v39  ;;  %v918_v41 = vpop.f32.mrb[7].mxu1  ;;  %v690_v46 = vrot.slane %v677_v39, %v356_v54 }
 0x3c9   :  { %v683_v42 = vrot.slane %v681_v40, 7  ;;  %v691_v48 = vsub.f32 %v592_v14, %v690_v46  ;;  %v692_v49 = vsub.f32 %v593_v11, %v690_v46 }
 0x3cb   :  { %v685_v43 = vsub.f32 %v677_v39, %v683_v42 }
 0x3cd   :  { %v686_v44 = vmax.f32 %v685_v43, 0.0 }
 0x3cf   :  { %v693_v45 = vadd.f32 1e-05, %v686_v44 }
 0x3d1   :  { %1100 = vrsqrt.f32 %v693_v45 }
 0x3db   :  { %v1101_v47 = vpop.eup %1100 }
 0x3dc   :  { %v698_v51 = vrot.slane %v1101_v47, %v364_v56 }
 0x3de   :  { %v699_v52 = vmul.f32 %v698_v51, %v691_v48  ;;  %v700_v55 = vmul.f32 %v698_v51, %v692_v49 }
 0x3e0   :  { %v701_v57 = vadd.f32 %v699_v52, %v1236_v50  ;;  %v702_v58 = vadd.f32 %v700_v55, %v1290_v13 }
 0x3e2   :  { %703 = vst [vmem:[%s1582_s4] sm:$0xff] %v701_v57  ;;  %704 = vst [vmem:[%s1582_s4 + $0x8] sm:$0xff] %v702_v58 }

</bundles_post_ra>
